<compile_context>
chip_gen: v5e
topology: v5e:2x2
jax: 0.10.0
libtpu: 0.0.40
codegen_flags: <defaults>
</compile_context>

<pallas_src>
import functools

import jax
import jax.numpy as jnp
from jax import lax
from jax.experimental import pallas as pl
from jax.experimental.pallas import tpu as pltpu

_LANE = 128


def _round_up(x, mult):
    return (x + mult - 1) // mult * mult


def _vmem_capacity_bytes():
    """Physical VMEM of the attached TPU generation (fallback: v7x's 64 MiB)."""
    try:
        return int(pltpu.get_tpu_info().vmem_capacity_bytes)
    except Exception:
        return 64 * 1024 * 1024


def _vmem_budget_bytes(cap):
    # Leave headroom for Mosaic internal scratch / semaphores / small outputs.
    return int(cap * 0.75)


def _vmem_limit(used_bytes, cap):
    want = int(used_bytes * 1.2) + (4 << 20)
    return int(max(32 << 20, min(int(cap * 0.92), want)))


def _plan_rows(m, feat_bytes, budget, n_acc):
    """Pick the G row-tile size.

    Returns (tm, m_pad, n_row_tiles). Prefers a single resident row tile
    (tm == m_pad == m, no padding, F streamed from HBM exactly once). The
    row-tiled fallback is only for M too large to keep G resident; it
    re-streams F once per row tile.
    """
    feat_min = 2 * m * _LANE * feat_bytes          # smallest double-buffered F chunk
    if n_acc * m * m * 4 + feat_min <= budget:
        return m, m, 1
    tm = 1 << 12
    while tm > 8:
        m_pad = _round_up(m, tm)
        if n_acc * tm * m_pad * 4 + 2 * m_pad * _LANE * feat_bytes <= budget:
            break
        tm //= 2
    tm = max(tm, 8)
    m_pad = _round_up(m, tm)
    return tm, m_pad, m_pad // tm


def _pick_tk(k_dim, m_pad, feat_bytes, fixed_bytes, budget):
    """K-chunk size: full-extent chunk for small K (no masking), otherwise the
    largest multiple-of-128 candidate whose double-buffered feature chunk fits
    next to the fixed-resident buffers (final partial chunk masked in-kernel)."""
    per_col = 2 * m_pad * feat_bytes               # double-buffered, per K column
    fits = lambda t: fixed_bytes + t * per_col <= budget
    if k_dim <= 512 and fits(_round_up(k_dim, _LANE)):
        return k_dim                                # one full-extent chunk
    for tk in (16384, 8192, 4096, 2048, 1024, 512, 256, 128):
        if tk < k_dim and fits(tk):
            return tk
    return min(k_dim, _LANE) if k_dim <= _LANE else _LANE


def _mask_tail(x, k, tk, k_dim):
    """Zero columns of the final (partial) K chunk that lie beyond K."""
    col = lax.broadcasted_iota(jnp.int32, x.shape, 1)
    return jnp.where(k * tk + col < k_dim, x, jnp.zeros_like(x))


# --------------------------------------------------------------------------
# Kernel 1: gram matrix only (used to build the detached target in __init__).
# --------------------------------------------------------------------------
def _gram_kernel(f_ref, g_ref, *, tm, n_row_tiles, tk, k_dim, inv_n):
    i = pl.program_id(0)
    k = pl.program_id(1)

    @pl.when(k == 0)
    def _():
        g_ref[...] = jnp.zeros_like(g_ref)

    rhs = f_ref[...]                                # (m_pad, tk)
    if k_dim % tk:
        rhs = _mask_tail(rhs, k, tk, k_dim)
    if n_row_tiles == 1:
        lhs = rhs
    else:
        lhs = f_ref[pl.ds(pl.multiple_of(i * tm, tm), tm), :]
        if k_dim % tk:
            lhs = _mask_tail(lhs, k, tk, k_dim)

    # F @ F.T without materializing a transpose: contract last dims of both.
    g_ref[...] += lax.dot_general(
        lhs, rhs,
        dimension_numbers=(((1,), (1,)), ((), ())),
        preferred_element_type=jnp.float32,
    )

    @pl.when(k == pl.num_programs(1) - 1)
    def _():
        g_ref[...] = g_ref[...] * inv_n


def gram_matrix(x_nchw, *, compute_dtype=jnp.float32):
    """Pallas gram matrix: returns (N*C, N*C) float32, matching the PyTorch fn."""
    n, c, h, w = x_nchw.shape
    m, k_dim = n * c, h * w
    feat_bytes = jnp.dtype(compute_dtype).itemsize

    cap = _vmem_capacity_bytes()
    budget = _vmem_budget_bytes(cap)
    # Output G tile is pipeline-managed: count 2 copies conservatively.
    tm, m_pad, n_row_tiles = _plan_rows(m, feat_bytes, budget, n_acc=2)
    fixed_bytes = 2 * tm * m_pad * 4
    tk = _pick_tk(k_dim, m_pad, feat_bytes, fixed_bytes, budget)
    nk = -(-k_dim // tk)

    feats = x_nchw.reshape(m, k_dim).astype(compute_dtype)  # reshape is free for NCHW
    if m_pad != m:
        feats = jnp.pad(feats, ((0, m_pad - m), (0, 0)))

    inv_n = 1.0 / float(n * c * h * w)
    kernel = functools.partial(_gram_kernel, tm=tm, n_row_tiles=n_row_tiles,
                               tk=tk, k_dim=k_dim, inv_n=inv_n)
    used = fixed_bytes + 2 * m_pad * tk * feat_bytes

    g = pl.pallas_call(
        kernel,
        out_shape=jax.ShapeDtypeStruct((m_pad, m_pad), jnp.float32),
        grid_spec=pltpu.PrefetchScalarGridSpec(
            num_scalar_prefetch=0,
            grid=(n_row_tiles, nk),
            in_specs=[pl.BlockSpec((m_pad, tk), lambda i, k: (0, k))],
            out_specs=pl.BlockSpec((tm, m_pad), lambda i, k: (i, 0)),
        ),
        compiler_params=pltpu.CompilerParams(
            dimension_semantics=("parallel", "arbitrary"),
            vmem_limit_bytes=_vmem_limit(used, cap),
        ),
    )(feats)
    if m_pad != m:
        g = g[:m, :m]
    return g


# --------------------------------------------------------------------------
# Kernel 2: fused gram + MSE loss (forward path).  G never touches HBM.
# --------------------------------------------------------------------------
def _style_loss_kernel(f_ref, tgt_hbm, partial_ref, acc_ref, tgt_vmem, tgt_sem,
                       *, tm, n_row_tiles, tk, k_dim, inv_n):
    i = pl.program_id(0)          # row tile of G
    k = pl.program_id(1)          # K chunk
    nk = pl.num_programs(1)

    # Target rows for this tile are only needed in the epilogue; DMA them from
    # HBM manually so they never sit double-buffered through the K loop.
    if n_row_tiles == 1:
        tgt_src = tgt_hbm
    else:
        tgt_src = tgt_hbm.at[pl.ds(pl.multiple_of(i * tm, tm), tm), :]
    tgt_copy = pltpu.make_async_copy(tgt_src, tgt_vmem, tgt_sem)

    @pl.when(k == 0)
    def _():
        acc_ref[...] = jnp.zeros_like(acc_ref)
        tgt_copy.start()

    rhs = f_ref[...]                                # (m_pad, tk)
    if k_dim % tk:
        rhs = _mask_tail(rhs, k, tk, k_dim)
    if n_row_tiles == 1:
        lhs = rhs
    else:
        lhs = f_ref[pl.ds(pl.multiple_of(i * tm, tm), tm), :]
        if k_dim % tk:
            lhs = _mask_tail(lhs, k, tk, k_dim)

    acc_ref[...] += lax.dot_general(
        lhs, rhs,
        dimension_numbers=(((1,), (1,)), ((), ())),
        preferred_element_type=jnp.float32,
    )

    @pl.when(k == nk - 1)
    def _():
        tgt_copy.wait()
        diff = acc_ref[...] * inv_n - tgt_vmem[...]
        partial_ref[0, 0, 0] = jnp.sum(diff * diff)


def style_loss(x_nchw, target_g, *, compute_dtype=jnp.float32):
    """Scalar mean((gram(x) - target_g)**2); target_g is the (M, M) f32 gram."""
    n, c, h, w = x_nchw.shape
    m, k_dim = n * c, h * w
    assert target_g.shape == (m, m), "target gram shape mismatch"
    feat_bytes = jnp.dtype(compute_dtype).itemsize

    cap = _vmem_capacity_bytes()
    budget = _vmem_budget_bytes(cap)
    # Fixed-resident buffers: gram accumulator + target row tile (one copy each).
    tm, m_pad, n_row_tiles = _plan_rows(m, feat_bytes, budget, n_acc=2)
    fixed_bytes = 2 * tm * m_pad * 4
    tk = _pick_tk(k_dim, m_pad, feat_bytes, fixed_bytes, budget)
    nk = -(-k_dim // tk)

    feats = x_nchw.reshape(m, k_dim).astype(compute_dtype)  # no K padding pass
    tgt = target_g.astype(jnp.float32)
    if m_pad != m:  # rare fallback only (huge M): pad rows; padded rows give 0
        feats = jnp.pad(feats, ((0, m_pad - m), (0, 0)))
        tgt = jnp.pad(tgt, ((0, m_pad - m), (0, m_pad - m)))

    inv_n = 1.0 / float(n * c * h * w)
    kernel = functools.partial(_style_loss_kernel, tm=tm, n_row_tiles=n_row_tiles,
                               tk=tk, k_dim=k_dim, inv_n=inv_n)
    used = fixed_bytes + 2 * m_pad * tk * feat_bytes

    partials = pl.pallas_call(
        kernel,
        out_shape=jax.ShapeDtypeStruct((n_row_tiles, 1, 1), jnp.float32),
        grid_spec=pltpu.PrefetchScalarGridSpec(
            num_scalar_prefetch=0,
            grid=(n_row_tiles, nk),
            in_specs=[
                pl.BlockSpec((m_pad, tk), lambda i, k: (0, k)),
                pl.BlockSpec(memory_space=pl.ANY),   # target gram: raw HBM ref
            ],
            out_specs=pl.BlockSpec((1, 1, 1), lambda i, k: (i, 0, 0)),
            scratch_shapes=[
                pltpu.VMEM((tm, m_pad), jnp.float32),   # gram accumulator
                pltpu.VMEM((tm, m_pad), jnp.float32),   # target row-tile buffer
                pltpu.SemaphoreType.DMA(()),
            ],
        ),
        compiler_params=pltpu.CompilerParams(
            dimension_semantics=("parallel", "arbitrary"),
            vmem_limit_bytes=_vmem_limit(used, cap),
        ),
    )(feats, tgt)

    # Padded rows/cols (fallback path only) contribute zero; divide by true M*M.
    return jnp.sum(partials) * (1.0 / float(m * m))


class StyleLoss:
    """JAX/Pallas port of the PyTorch StyleLoss module.

    __init__ stores the (detached) target gram matrix; forward computes the MSE
    style loss (stored on self.loss) and returns the input unchanged.
    `compute_dtype=jnp.bfloat16` halves the HBM feature stream (f32 MXU
    accumulation); default f32 bit-matches the PyTorch reference.
    """

    def __init__(self, target_feature, *, compute_dtype=jnp.float32):
        n, c, _, _ = target_feature.shape
        self._m = n * c
        self._compute_dtype = compute_dtype
        self.target = gram_matrix(target_feature)   # (m, m) f32, like PyTorch
        self.loss = None

    def forward(self, x):
        n, c, _, _ = x.shape
        assert n * c == self._m, "batch*channels must match the target gram"
        self.loss = style_loss(x, self.target, compute_dtype=self._compute_dtype)
        return x  # forward returns its input unchanged, like the PyTorch module

    __call__ = forward


if __name__ == "__main__":
    key = jax.random.PRNGKey(0)
    k1, k2 = jax.random.split(key)

    # Small shapes consistent with a conv feature map: N=2, C=4, H=W=16.
    target_feature = jax.random.normal(k1, (2, 4, 16, 16), jnp.float32)
    x = jax.random.normal(k2, (2, 4, 16, 16), jnp.float32)

    module = StyleLoss(target_feature)
    out = module(x)

    jax.block_until_ready(out)
    jax.block_until_ready(module.loss)

    # Pure-JAX reference check.
    def gram_ref(t):
        n, c, h, w = t.shape
        f = t.reshape(n * c, h * w)
        return (f @ f.T) / (n * c * h * w)

    g_t_ref = gram_ref(target_feature)
    g_x_ref = gram_ref(x)
    loss_ref = jnp.mean((g_x_ref - g_t_ref) ** 2)

    assert out.shape == x.shape
    assert bool(jnp.allclose(out, x))
    assert bool(jnp.allclose(module.target, g_t_ref, rtol=1e-5, atol=1e-6))
    assert bool(jnp.allclose(module.loss, loss_ref, rtol=1e-5, atol=1e-6))

    print("KERNEL_OK")
</pallas_src>

<mosaic_0001>
module attributes {stable_mosaic.version = 11 : i64} {
  func.func @_gram_kernel(%arg0: i32, %arg1: i32, %arg2: memref<8x256xf32, #tpu.memory_space<vmem>>, %arg3: memref<8x8xf32, #tpu.memory_space<vmem>>) attributes {dimension_semantics = [#tpu.dimension_semantics<parallel>, #tpu.dimension_semantics<arbitrary>], iteration_bounds = array<i64: 1, 1>, scalar_prefetch = 0 : i64, scratch_operands = 0 : i64, tpu.core_type = #tpu.core_type<tc>, window_params = [{transform_indices = @transform_0, window_bounds = array<i64: 8, 256>}, {transform_indices = @transform_1, window_bounds = array<i64: 8, 8>}]} {
    %c0_i32 = arith.constant 0 : i32
    %0 = arith.cmpi eq, %arg1, %c0_i32 : i32
    %1 = arith.extui %0 : i1 to i32
    %c0_i32_0 = arith.constant 0 : i32
    %2 = arith.cmpi ne, %1, %c0_i32_0 : i32
    scf.if %2 {
      %cst_8 = arith.constant 0.000000e+00 : f32
      %11 = vector.broadcast %cst_8 : f32 to vector<8x8xf32>
      %c0_9 = arith.constant 0 : index
      %c0_10 = arith.constant 0 : index
      %12 = vector.load %arg3[%c0_9, %c0_10] : memref<8x8xf32, #tpu.memory_space<vmem>>, vector<8x8xf32>
      tpu.vector_store %arg3[%c0_9, %c0_10], %11 {strides = array<i32>} : memref<8x8xf32, #tpu.memory_space<vmem>>, vector<8x8xf32>,
    } else {
    }
    %c0 = arith.constant 0 : index
    %c0_1 = arith.constant 0 : index
    %3 = vector.load %arg2[%c0, %c0_1] : memref<8x256xf32, #tpu.memory_space<vmem>>, vector<8x256xf32>
    %c0_2 = arith.constant 0 : index
    %c0_3 = arith.constant 0 : index
    %4 = vector.load %arg3[%c0_2, %c0_3] : memref<8x8xf32, #tpu.memory_space<vmem>>, vector<8x8xf32>
    %cst = arith.constant dense<0.000000e+00> : vector<8x8xf32>
    %5 = tpu.matmul %3, %3, %cst {dimension_numbers = #tpu.dot_dimension_numbers<[1], [1], [0], [0], [0, 0, 1, 0], [], []>} : vector<8x256xf32>, vector<8x256xf32>, vector<8x8xf32> -> vector<8x8xf32>
    %6 = arith.addf %4, %5 : vector<8x8xf32>
    %c0_4 = arith.constant 0 : index
    %c0_5 = arith.constant 0 : index
    %7 = vector.load %arg3[%c0_4, %c0_5] : memref<8x8xf32, #tpu.memory_space<vmem>>, vector<8x8xf32>
    tpu.vector_store %arg3[%c0_4, %c0_5], %6 {strides = array<i32>} : memref<8x8xf32, #tpu.memory_space<vmem>>, vector<8x8xf32>,
    %c0_i32_6 = arith.constant 0 : i32
    %8 = arith.cmpi eq, %arg1, %c0_i32_6 : i32
    %9 = arith.extui %8 : i1 to i32
    %c0_i32_7 = arith.constant 0 : i32
    %10 = arith.cmpi ne, %9, %c0_i32_7 : i32
    scf.if %10 {
      %c0_8 = arith.constant 0 : index
      %c0_9 = arith.constant 0 : index
      %11 = vector.load %arg3[%c0_8, %c0_9] : memref<8x8xf32, #tpu.memory_space<vmem>>, vector<8x8xf32>
      %cst_10 = arith.constant 4.8828125E-4 : f32
      %12 = vector.broadcast %cst_10 : f32 to vector<8x8xf32>
      %13 = arith.mulf %11, %12 : vector<8x8xf32>
      %c0_11 = arith.constant 0 : index
      %c0_12 = arith.constant 0 : index
      %14 = vector.load %arg3[%c0_11, %c0_12] : memref<8x8xf32, #tpu.memory_space<vmem>>, vector<8x8xf32>
      tpu.vector_store %arg3[%c0_11, %c0_12], %13 {strides = array<i32>} : memref<8x8xf32, #tpu.memory_space<vmem>>, vector<8x8xf32>,
    } else {
    }
    return
  }
  func.func @transform_0(%arg0: i32, %arg1: i32) -> (i32, i32) {
    %c0_i32 = arith.constant 0 : i32
    %c0_i32_0 = arith.constant 0 : i32
    return %c0_i32, %arg1 : i32, i32
  }
  func.func @transform_1(%arg0: i32, %arg1: i32) -> (i32, i32) {
    %c0_i32 = arith.constant 0 : i32
    %c0_i32_0 = arith.constant 0 : i32
    return %arg0, %c0_i32 : i32, i32
  }
}

</mosaic_0001>

<bundles_post_ra>
// kernel: tpu_custom_call.1
= control target key start
LH: loop header
LB: loop body
LE: loop exit
PB: predicated region body
PF: predicated region fallthrough
CT: control target
= control target key end

     0   :  { %6 = vsyncpa [#allocation3], 0  ;;  %s175_s0 = inlined_call_operand.hbm [shape: f32[8,256], index: 0, kind: input, shape index: {}]   ;;  %s176_s1 = inlined_call_operand.hbm [shape: f32[8,8], index: 1, kind: output, shape index: {}]  }
   0x1   :  { %7 = vsyncpa [#allocation4], 0  ;;  %s13_s8 = sshll.u32 %s175_s0, 4  ;;  %s153_s9 = smov [#allocation2]   ;;  %s14_s8 = int_to_ptr.hbm [resolvable:$true] %s13_s8 }
   0x2   :  { %s15_s10 = sshll.u32 %s153_s9, 4  ;;  %s16_s10 = int_to_ptr.vmem [resolvable:$true] %s15_s10 }
   0x3   :  { %18 = dma.hbm_to_vmem [thread:$0]  %s14_s8, 256, %s16_s10, [#allocation3]  }
   0x4   :  { %149 = dma.done.wait [#allocation3], 256  }
   0x5   :  { %150 = vsyncadd [#allocation3], 4294967040  ;;  %v29_v0 = vld [vmem:[#allocation2] sm:$0xff]  ;;  %v30_v1 = vld [vmem:[#allocation2 + $0x8] sm:$0xff]  ;;  %vm27_vm0 = vcmask 64512   ;;  %v154_v2 = vmov 0.0  }
   0x6   :  { %47 = vmatpush.xpose.msra.mxu0 %v29_v0  ;;  %67 = vmatpush.xpose.msra.mxu1 %v30_v1  ;;  %28 = vst.msk [vmem:[#allocation5] sm:$0xff] %vm27_vm0, %v154_v2  ;;  %s155_s0 = smov [#allocation5]   ;;  %s88_s14 = sshll.u32 %s176_s1, 4  ;;  %s89_s14 = int_to_ptr.hbm [resolvable:$true] %s88_s14 }
   0x7   :  { %s86_s11 = sshll.u32 %s155_s0, 4  ;;  %s87_s11 = int_to_ptr.vmem [resolvable:$true] %s86_s11 }
   0x9   :  { %48 = vmatmul.f32.vlgmr.msra.gmra.mxu0 %v29_v0  ;;  %68 = vmatmul.f32.vlgmr.msra.gmra.mxu1 %v30_v1 }
   0xd   :  { %v31_v4 = vld [vmem:[#allocation5] sm:$0xff] }
  0x86   :  { %v49_v3 = vpop.f32.mrf.mxu0  ;;  %v69_v5 = vpop.f32.mrf.mxu1 }
  0x87   :  { %v70_v6 = vadd.f32 %v69_v5, %v49_v3 }
  0x89   :  { %v72_v7 = vadd.f32 %v70_v6, %v31_v4 }
  0x8b   :  { %74 = vst.msk [vmem:[#allocation5] sm:$0xff] %vm27_vm0, %v72_v7 }
  0x92   :  { %v78_v8 = vld [vmem:[#allocation5] sm:$0xff] }
  0x93   :  { %v79_v9 = vmul.f32 0.00048828125, %v78_v8 }
  0x95   :  { %80 = vst.msk [vmem:[#allocation5] sm:$0xff] %vm27_vm0, %v79_v9 }
  0x96   :  { %91 = dma.vmem_to_hbm [thread:$0]  %s87_s11, 128, %s89_s14, [#allocation4]  }
  0x97   :  { %151 = dma.done.wait [#allocation4], 128  }
  0x98   :  { %152 = vsyncadd [#allocation4], 4294967168 }
  0x99   :  { %96 = vsyncpa [#allocation3], 1 }
  0x9a   :  { %97 = vsyncpa [#allocation4], 1 }

</bundles_post_ra>
